<compile_context>
chip_gen: v7x
topology: tpu7x:2x2x1
jax: 0.10.0
libtpu: 0.0.40
codegen_flags: <defaults>
</compile_context>

<pallas_src>
import jax
import jax.numpy as jnp
from jax.experimental import pallas as pl
from jax.experimental.pallas import tpu as pltpu


def _round_up(v: int, m: int) -> int:
    return (v + m - 1) // m * m


def _vmem_capacity_bytes() -> int:
    """Per-core physical VMEM; conservative fallback if the query is unavailable."""
    try:
        info = pltpu.get_tpu_info()
        return int(getattr(info, "vmem_capacity_bytes", 64 << 20))
    except Exception:
        return 64 << 20          # v7x per-TC size: safe lower bound on every generation


def _pick_tiling(n: int, dim: int, hp: int):
    """Pick (tile_n, vmem_limit_bytes): biggest N-tile that fits the per-core VMEM
    budget (~96 MiB on v5e/v6e's 128 MiB VMEM, ~48 MiB per TC on v7x's 64 MiB)."""
    cap = _vmem_capacity_bytes()
    usable = min(cap, 128 << 20) * 3 // 4            # 96 MiB v5e/v6e, 48 MiB v7x
    per_row = (
        2 * dim * 4        # double-buffered f32 x tile
        + dim * 2          # in-kernel bf16 cast of the x tile
        + 4 * hp * 4       # h / relu'd h f32 intermediates (with 2x slack)
        + 2 * 4            # double-buffered (tile_n, 1) score block
    )
    fixed = (
        2 * dim * hp * 2   # resident w1 (bf16, default double-buffered)
        + 4 * hp * 4 * 2   # resident -b1 and w2 (f32, double-buffered)
        + (1 << 20)        # compiler scratch / misc slack
    )
    # TODO(synk): for dim large enough that resident w1 itself doesn't fit VMEM,
    # a K-tiled variant would be needed; not required for this module's sizes.
    budget_rows = max(8, (usable - fixed) // per_row)
    if budget_rows >= n:
        tile_n = n                                   # whole-N block (always layout-legal)
    else:
        tile_n = max(8, (budget_rows // 8) * 8)      # sublane-aligned; ragged last block OK
    return int(tile_n), int(usable)


def _score_kernel(w1_ref, nb1_ref, w2_ref, x_ref, s_ref):
    # w1 : (dim, HP)   bf16  resident   Linear1 weight, hidden zero-padded 100->128
    # nb1: (1, HP)     f32   resident   -b1  (relu(h+b1) = max(h, -b1) + b1)
    # w2 : (HP, 1)     f32   resident   Linear2 weight column (hidden-padded)
    # x  : (tile, dim) f32   streamed   natural row-major layout; cast to bf16 here
    # s  : (tile, 1)   f32              scores, shifted by the softmax-invariant
    #                                   constant sum_j w2_j*b1_j (+ b2), both dropped
    h = jnp.dot(x_ref[...].astype(jnp.bfloat16), w1_ref[...],
                preferred_element_type=jnp.float32)            # MXU, f32 accumulate
    a = jnp.maximum(h, nb1_ref[...])                           # single VPU op (bias+ReLU)
    s_ref[...] = jnp.dot(a, w2_ref[...],
                         preferred_element_type=jnp.float32)   # width-1 dot on idle MXU


@jax.jit
def attention_forward(x, w1, b1, w2, b2=None):
    """x: (N, dim); w1: (dim, hidden); b1: (1, hidden) or (hidden,); w2: (hidden, 1) or (hidden,).
    b2 is accepted for API parity but unused: softmax is shift-invariant, so b2 and the
    constant sum_j w2_j*b1_j are dropped from the scores.  Returns (1, N) f32 softmax
    weights, matching the PyTorch module (first matmul runs in bf16 with f32 accumulate)."""
    del b2
    n, dim = x.shape
    hidden = w1.shape[-1]
    hp = max(128, _round_up(hidden, 128))            # lane-aligned hidden pad (100 -> 128)
    tile_n, vmem_limit = _pick_tiling(n, dim, hp)

    # Tiny resident parameters; zero-padded hidden columns contribute exactly 0.
    w1_p = jnp.zeros((dim, hp), jnp.bfloat16).at[:, :hidden].set(w1.astype(jnp.bfloat16))
    nb1 = jnp.zeros((1, hp), jnp.float32).at[0, :hidden].set(
        (-b1.reshape(-1)).astype(jnp.float32))
    w2_p = jnp.zeros((hp, 1), jnp.float32).at[:hidden, 0].set(
        w2.reshape(-1).astype(jnp.float32))

    scores = pl.pallas_call(
        _score_kernel,
        out_shape=jax.ShapeDtypeStruct((n, 1), jnp.float32),
        grid_spec=pltpu.PrefetchScalarGridSpec(
            num_scalar_prefetch=0,
            grid=(pl.cdiv(n, tile_n),),
            in_specs=[
                pl.BlockSpec((dim, hp), lambda i: (0, 0)),      # w1   resident
                pl.BlockSpec((1, hp), lambda i: (0, 0)),        # -b1  resident
                pl.BlockSpec((hp, 1), lambda i: (0, 0)),        # w2   resident
                pl.BlockSpec((tile_n, dim), lambda i: (i, 0)),  # x streamed, natural layout
            ],
            out_specs=pl.BlockSpec((tile_n, 1), lambda i: (i, 0)),
        ),
        compiler_params=pltpu.CompilerParams(
            dimension_semantics=("parallel",),        # shards the N grid across v7x's 2 TCs
            vmem_limit_bytes=vmem_limit),
    )(w1_p, nb1, w2_p, x)

    # Final softmax over the tiny (1, N) score row in plain XLA (per perf review:
    # a second Pallas launch costs more than this row is worth).
    return jax.nn.softmax(scores.T, axis=1)


def init_params(key, dim, hidden=100):
    """PyTorch nn.Linear default init (uniform +/- 1/sqrt(fan_in)); weights stored
    as (in_features, out_features)."""
    k1, k2, k3, k4 = jax.random.split(key, 4)
    lim1 = 1.0 / jnp.sqrt(jnp.float32(dim))
    lim2 = 1.0 / jnp.sqrt(jnp.float32(hidden))
    w1 = jax.random.uniform(k1, (dim, hidden), jnp.float32, -lim1, lim1)
    b1 = jax.random.uniform(k2, (1, hidden), jnp.float32, -lim1, lim1)
    w2 = jax.random.uniform(k3, (hidden, 1), jnp.float32, -lim2, lim2)
    b2 = jax.random.uniform(k4, (1, 1), jnp.float32, -lim2, lim2)
    return w1, b1, w2, b2


if __name__ == "__main__":
    N, DIM, HIDDEN = 8, 32, 100
    key = jax.random.PRNGKey(0)
    kx, kp = jax.random.split(key)

    x = jax.random.normal(kx, (N, DIM), jnp.float32)
    w1, b1, w2, b2 = init_params(kp, DIM, HIDDEN)

    out = jax.block_until_ready(attention_forward(x, w1, b1, w2, b2))

    # Pure-JAX reference following the PyTorch formula (bf16 first matmul to mirror
    # the kernel's MXU precision; everything else f32).
    h_ref = jnp.maximum(
        jnp.dot(x.astype(jnp.bfloat16), w1.astype(jnp.bfloat16),
                preferred_element_type=jnp.float32) + b1, 0.0)
    s_ref = jnp.dot(h_ref, w2, precision=jax.lax.Precision.HIGHEST) + b2
    ref = jax.nn.softmax(s_ref.T, axis=1)              # (1, N)

    assert out.shape == (1, N), out.shape
    assert jnp.allclose(out, ref, atol=2e-3, rtol=2e-3), (out, ref)
    print("KERNEL_OK")
</pallas_src>

<mosaic_0001>
module attributes {stable_mosaic.version = 11 : i64} {
  func.func @_score_kernel(%arg0: i32, %arg1: memref<32x128xbf16, #tpu.memory_space<vmem>>, %arg2: memref<1x128xf32, #tpu.memory_space<vmem>>, %arg3: memref<128x1xf32, #tpu.memory_space<vmem>>, %arg4: memref<8x32xf32, #tpu.memory_space<vmem>>, %arg5: memref<8x1xf32, #tpu.memory_space<vmem>>) attributes {dimension_semantics = [#tpu.dimension_semantics<parallel>], iteration_bounds = array<i64: 1>, scalar_prefetch = 0 : i64, scratch_operands = 0 : i64, tpu.core_type = #tpu.core_type<tc>, window_params = [{pipeline_mode = #tpu.pipeline_mode<synchronous>, transform_indices = @transform_0, window_bounds = array<i64: 32, 128>}, {pipeline_mode = #tpu.pipeline_mode<synchronous>, transform_indices = @transform_1, window_bounds = array<i64: 1, 128>}, {pipeline_mode = #tpu.pipeline_mode<synchronous>, transform_indices = @transform_2, window_bounds = array<i64: 128, 1>}, {transform_indices = @transform_3, window_bounds = array<i64: 8, 32>}, {transform_indices = @transform_4, window_bounds = array<i64: 8, 1>}]} {
    %c0 = arith.constant 0 : index
    %c0_0 = arith.constant 0 : index
    %0 = vector.load %arg4[%c0, %c0_0] : memref<8x32xf32, #tpu.memory_space<vmem>>, vector<8x32xf32>
    %1 = arith.truncf %0 : vector<8x32xf32> to vector<8x32xbf16>
    %c0_1 = arith.constant 0 : index
    %c0_2 = arith.constant 0 : index
    %2 = vector.load %arg1[%c0_1, %c0_2] : memref<32x128xbf16, #tpu.memory_space<vmem>>, vector<32x128xbf16>
    %cst = arith.constant dense<0.000000e+00> : vector<8x128xf32>
    %3 = tpu.matmul %1, %2, %cst {dimension_numbers = #tpu.dot_dimension_numbers<[1], [0], [0], [1], [0, 0, 1, 1], [], []>} : vector<8x32xbf16>, vector<32x128xbf16>, vector<8x128xf32> -> vector<8x128xf32>
    %c0_3 = arith.constant 0 : index
    %c0_4 = arith.constant 0 : index
    %4 = vector.load %arg2[%c0_3, %c0_4] : memref<1x128xf32, #tpu.memory_space<vmem>>, vector<1x128xf32>
    %5 = vector.broadcast %4 : vector<1x128xf32> to vector<8x128xf32>
    %6 = arith.maximumf %3, %5 : vector<8x128xf32>
    %c0_5 = arith.constant 0 : index
    %c0_6 = arith.constant 0 : index
    %7 = vector.load %arg3[%c0_5, %c0_6] : memref<128x1xf32, #tpu.memory_space<vmem>>, vector<128x1xf32>
    %cst_7 = arith.constant dense<0.000000e+00> : vector<8x1xf32>
    %8 = tpu.matmul %6, %7, %cst_7 {dimension_numbers = #tpu.dot_dimension_numbers<[1], [0], [0], [1], [0, 0, 1, 1], [], []>} : vector<8x128xf32>, vector<128x1xf32>, vector<8x1xf32> -> vector<8x1xf32>
    %c0_8 = arith.constant 0 : index
    %c0_9 = arith.constant 0 : index
    %9 = vector.load %arg5[%c0_8, %c0_9] : memref<8x1xf32, #tpu.memory_space<vmem>>, vector<8x1xf32>
    tpu.vector_store %arg5[%c0_8, %c0_9], %8 {strides = array<i32>} : memref<8x1xf32, #tpu.memory_space<vmem>>, vector<8x1xf32>,
    return
  }
  func.func @transform_0(%arg0: i32) -> (i32, i32) {
    %c0_i32 = arith.constant 0 : i32
    %c0_i32_0 = arith.constant 0 : i32
    %c0_i32_1 = arith.constant 0 : i32
    return %c0_i32, %c0_i32_0 : i32, i32
  }
  func.func @transform_1(%arg0: i32) -> (i32, i32) {
    %c0_i32 = arith.constant 0 : i32
    %c0_i32_0 = arith.constant 0 : i32
    %c0_i32_1 = arith.constant 0 : i32
    return %c0_i32, %c0_i32_0 : i32, i32
  }
  func.func @transform_2(%arg0: i32) -> (i32, i32) {
    %c0_i32 = arith.constant 0 : i32
    %c0_i32_0 = arith.constant 0 : i32
    %c0_i32_1 = arith.constant 0 : i32
    return %c0_i32, %c0_i32_0 : i32, i32
  }
  func.func @transform_3(%arg0: i32) -> (i32, i32) {
    %c0_i32 = arith.constant 0 : i32
    %c0_i32_0 = arith.constant 0 : i32
    return %arg0, %c0_i32 : i32, i32
  }
  func.func @transform_4(%arg0: i32) -> (i32, i32) {
    %c0_i32 = arith.constant 0 : i32
    %c0_i32_0 = arith.constant 0 : i32
    return %arg0, %c0_i32 : i32, i32
  }
}

</mosaic_0001>

<bundles_post_ra>
// kernel: attention_forward.1
= control target key start
LH: loop header
LB: loop body
LE: loop exit
PB: predicated region body
PF: predicated region fallthrough
CT: control target
= control target key end

     0   :  { %v276_v0 = vmov 0.0   ;;  %vm277_vm0 = vmmov 0   ;;  %v278_v3 = vmov 0.0|0.0   ;;  %vm36_vm1 = vcmask 261120   ;;  %s367_s0 = inlined_call_operand.vmem [shape: bf16[32,128], index: 0, kind: input, shape index: {}]   ;;  %s368_s3 = inlined_call_operand.vmem [shape: f32[8,32], index: 3, kind: input, shape index: {}]   ;;  %s369_s2 = inlined_call_operand.vmem [shape: f32[128,1], index: 2, kind: input, shape index: {}]   ;;  %s370_s1 = inlined_call_operand.vmem [shape: f32[1,128], index: 1, kind: input, shape index: {}]   ;;  %s371_s4 = inlined_call_operand.vmem [shape: f32[8,1], index: 4, kind: output, shape index: {}]  }
   0x1   :  { %204 = vmatprep.subr.bf16.mxu0 %v276_v0  ;;  %v274_v1 = vld [vmem:[%s367_s0] sm:$0xff]   ;;  %208 = vmatprep.mubr.msk.bf16.mxu0 %vm277_vm0, %v276_v0  ;;  %v275_v2 = vld [vmem:[%s367_s0 + $0x8] sm:$0xff]   ;;  %v90_v8 = vld [vmem:[%s369_s2 + $0x10] sm:$0xff]  ;;  %vm174_vm2 = vcmask 7168  }
   0x2   :  { %247 = vmatprep.subr.bf16.mxu1 %v278_v3  ;;  %244 = vmatprep.mubr.msk.f32.mxu1 %vm277_vm0, %v276_v0  ;;  %v18_v4 = vld [vmem:[%s368_s3] sm:$0xff]  ;;  %v89_v6 = vld [vmem:[%s369_s2 + $0x8] sm:$0xff]  ;;  %v91_v9 = vld [vmem:[%s369_s2 + $0x18] sm:$0xff] }
   0x3   :  { %205 = vmatpush3.bf16.msra.mxu0 %v274_v1  ;;  %v88_v5 = vld [vmem:[%s369_s2] sm:$0xff]  ;;  %v19_v10 = vpack.c.bf16 %v18_v4, %v18_v4  ;;  %v251_v11 = vpack.c.bf16 %v91_v9, %v90_v8  ;;  %v93_v13 = vld [vmem:[%s369_s2 + $0x28] sm:$0xff]  ;;  %v94_v15 = vld [vmem:[%s369_s2 + $0x30] sm:$0xff] }
   0x4   :  { %206 = vmatprep.subr.bf16.mxu0 %v276_v0  ;;  %v248_v7 = vpack.c.bf16 %v89_v6, %v88_v5  ;;  %v92_v12 = vld [vmem:[%s369_s2 + $0x20] sm:$0xff]  ;;  %v95_v16 = vld [vmem:[%s369_s2 + $0x38] sm:$0xff]  ;;  %v97_v19 = vld [vmem:[%s369_s2 + $0x48] sm:$0xff] }
   0x5   :  { %v254_v14 = vpack.c.bf16 %v93_v13, %v92_v12  ;;  %v257_v17 = vpack.c.bf16 %v95_v16, %v94_v15  ;;  %v96_v18 = vld [vmem:[%s369_s2 + $0x40] sm:$0xff]  ;;  %v98_v21 = vld [vmem:[%s369_s2 + $0x50] sm:$0xff]  ;;  %v99_v22 = vld [vmem:[%s369_s2 + $0x58] sm:$0xff] }
   0x6   :  { %249 = vmatpush3.bf16.msra.mxu1 %v248_v7  ;;  %v260_v20 = vpack.c.bf16 %v97_v19, %v96_v18  ;;  %v263_v23 = vpack.c.bf16 %v99_v22, %v98_v21  ;;  %v100_v24 = vld [vmem:[%s369_s2 + $0x60] sm:$0xff]  ;;  %v101_v25 = vld [vmem:[%s369_s2 + $0x68] sm:$0xff]  ;;  %v102_v27 = vld [vmem:[%s369_s2 + $0x70] sm:$0xff] }
   0x7   :  { %207 = vmatpush3.bf16.msra.mxu0 %v275_v2  ;;  %250 = vmatprep.subr.bf16.mxu1 %v278_v3  ;;  %v266_v26 = vpack.c.bf16 %v101_v25, %v100_v24  ;;  %v103_v28 = vld [vmem:[%s369_s2 + $0x78] sm:$0xff]  ;;  %v183_v30 = vld [vmem:[%s370_s1] ss:$0 sm:$0xff] }
   0x8   :  { %v269_v29 = vpack.c.bf16 %v103_v28, %v102_v27 }
   0xa   :  { %209 = vmatmul.mubr.msk.bf16.vlgmr.msra.gmra.mrb[0].mxu0 %vm36_vm1, %v19_v10  ;;  %252 = vmatpush3.bf16.msra.mxu1 %v251_v11 }
   0xb   :  { %253 = vmatprep.subr.bf16.mxu1 %v278_v3 }
   0xe   :  { %255 = vmatpush3.bf16.msra.mxu1 %v254_v14 }
   0xf   :  { %256 = vmatprep.subr.bf16.mxu1 %v278_v3 }
  0x12   :  { %258 = vmatpush3.bf16.msra.mxu1 %v257_v17 }
  0x13   :  { %259 = vmatprep.subr.bf16.mxu1 %v278_v3 }
  0x16   :  { %261 = vmatpush3.bf16.msra.mxu1 %v260_v20 }
  0x17   :  { %262 = vmatprep.subr.bf16.mxu1 %v278_v3 }
  0x1a   :  { %264 = vmatpush3.bf16.msra.mxu1 %v263_v23 }
  0x1b   :  { %265 = vmatprep.subr.bf16.mxu1 %v278_v3 }
  0x1e   :  { %267 = vmatpush3.bf16.msra.mxu1 %v266_v26 }
  0x1f   :  { %268 = vmatprep.subr.bf16.mxu1 %v278_v3 }
  0x22   :  { %270 = vmatpush3.bf16.msra.mxu1 %v269_v29 }
  0xdd   :  { %v74_v31 = vpop.f32.mrb[0].mxu0 }
  0xde   :  { %v87_v32 = vmax.f32 %v74_v31, %v183_v30  ;;  %v210_v33 = vpop.f32.mrb[1].mxu0 }
  0xdf   :  { %v77_v34 = vpop.f32.mrb[2].mxu0 }
  0xe0   :  { %v211_v35 = vpop.f32.mrb[3].mxu0  ;;  %245 = vmatmul.mubr.f32.vlgmr.msra.gmra.mrb[0].mxu1 %v87_v32 }
 0x1b3   :  { %v170_v36 = vpop.f32.mrb[0].mxu1 }
 0x1b4   :  { %175 = vst.msk [vmem:[%s371_s4] sm:$0xff] %vm174_vm2, %v170_v36  ;;  %v246_v37 = vpop.f32.mrb[1].mxu1 }

</bundles_post_ra>
